<compile_context>
chip_gen: v6e
topology: v6e:2x2x1
jax: 0.10.0
libtpu: 0.0.40
codegen_flags: <defaults>
</compile_context>

<pallas_src>
import functools
import math

import jax
import jax.numpy as jnp
from jax.experimental import pallas as pl
from jax.experimental.pallas import tpu as pltpu


def _focal_loss_kernel(x_ref, t_ref, out_ref, *, gamma, n_cols, tile_l,
                       mask_tail, accumulate):
    """One grid step: (C, TILE_L) logits + (1, TILE_L) targets -> per-lane focal loss."""
    l = pl.program_id(1)

    if accumulate:
        @pl.when(l == 0)
        def _():
            out_ref[...] = jnp.zeros_like(out_ref)

    x = x_ref[...].astype(jnp.float32)                 # (C, TILE_L)
    t = t_ref[...]                                     # (1, TILE_L) int32

    # Numerically-stable log_softmax along the class (sublane) axis.
    m = jnp.max(x, axis=0, keepdims=True)              # (1, TILE_L)
    z = x - m
    lse = jnp.log(jnp.sum(jnp.exp(z), axis=0, keepdims=True))

    # Gather z[target[col], col] via a one-hot compare (no dynamic gather on TPU).
    cls = jax.lax.broadcasted_iota(jnp.int32, x.shape, 0)
    zt = jnp.sum(jnp.where(cls == t, z, 0.0), axis=0, keepdims=True)
    logpt = zt - lse                                   # (1, TILE_L)
    pt = jnp.exp(logpt)
    one_minus_pt = 1.0 - pt

    g = float(gamma)
    if g == 0.0:
        weight = jnp.ones_like(pt)
    elif g.is_integer() and g > 0:
        # Common case (gamma=2): integer_pow, avoids the exp/log EUP pair and pow(0,g) edge.
        weight = one_minus_pt ** int(g)
    else:
        weight = jnp.power(jnp.maximum(one_minus_pt, 0.0), jnp.float32(g))
    loss = -weight * logpt                             # (1, TILE_L)

    if accumulate:
        if mask_tail:
            # Ragged last tile along L: zero out lanes past the valid range.
            col = jax.lax.broadcasted_iota(jnp.int32, loss.shape, 1) + l * tile_l
            loss = jnp.where(col < n_cols, loss, 0.0)
        out_ref[...] += loss
    else:
        # reduction='none': write the per-lane loss; Pallas masks the ragged tail store.
        out_ref[...] = loss


def _choose_tile_l(n_cols, n_classes, itemsize, target_block_bytes=2 * 1024 * 1024):
    """Largest lane tile (multiple of 128, <= n_cols) giving ~target_block_bytes of logits per step."""
    if n_cols <= 128:
        return n_cols                                   # full-extent block
    budget_cols = max(128, target_block_bytes // max(1, n_classes * itemsize))
    tile = min(budget_cols, (n_cols // 128) * 128)
    return max(128, (tile // 128) * 128)


def focal_loss(logits, target, gamma=0.0, reduction="mean", tile_l=None):
    """Pallas FocalLoss forward. logits: (N, C, *spatial) or (N, C); target: integer class ids."""
    assert reduction in ("mean", "sum", "none")
    assert logits.ndim >= 2
    c = logits.shape[1]

    if logits.ndim > 2:
        b = logits.shape[0]
        n_cols = math.prod(logits.shape[2:])
        x = logits.reshape(b, c, n_cols)                # free reshape; stays NCHW (no transpose pass)
        t = target.reshape(b, 1, n_cols).astype(jnp.int32)
    else:
        # (N, C): put the N "positions" on the lane axis (small one-off transpose).
        b = 1
        n_cols = logits.shape[0]
        x = jnp.transpose(logits, (1, 0)).reshape(1, c, n_cols)
        t = target.reshape(1, 1, n_cols).astype(jnp.int32)

    n_valid = b * n_cols
    if tile_l is None:
        tile_l = _choose_tile_l(n_cols, c, x.dtype.itemsize)
    tile_l = int(tile_l)
    grid = (b, pl.cdiv(n_cols, tile_l))
    mask_tail = (n_cols % tile_l) != 0
    accumulate = reduction != "none"

    kernel = functools.partial(
        _focal_loss_kernel,
        gamma=float(gamma),
        n_cols=int(n_cols),
        tile_l=tile_l,
        mask_tail=bool(mask_tail),
        accumulate=accumulate,
    )

    if accumulate:
        # Lane-dense per-batch accumulator block, resident across the L axis.
        out_shape = jax.ShapeDtypeStruct((b, 1, tile_l), jnp.float32)
        out_spec_args = ((None, 1, tile_l), lambda n, l: (n, 0, 0))
    else:
        # Per-element loss, one distinct output block per (batch, L-tile) step.
        out_shape = jax.ShapeDtypeStruct((b, 1, n_cols), jnp.float32)
        out_spec_args = ((None, 1, tile_l), lambda n, l: (n, 0, l))

    def _run(multibuffer):
        logits_kwargs = {}
        if multibuffer:
            logits_kwargs["pipeline_mode"] = pl.Buffered(3)  # hide DMA latency on this streaming kernel
        in_specs = [
            pl.BlockSpec((None, c, tile_l), lambda n, l: (n, 0, l), **logits_kwargs),
            pl.BlockSpec((None, 1, tile_l), lambda n, l: (n, 0, l)),
        ]
        return pl.pallas_call(
            kernel,
            out_shape=out_shape,
            grid=grid,
            in_specs=in_specs,
            out_specs=pl.BlockSpec(*out_spec_args),
            compiler_params=pltpu.CompilerParams(
                dimension_semantics=("parallel", "arbitrary"),
                vmem_limit_bytes=32 * 1024 * 1024,
            ),
        )(x, t)

    try:
        out = _run(multibuffer=True)
    except Exception:  # older JAX without pipeline_mode / Buffered: identical kernel, default buffering
        out = _run(multibuffer=False)

    if reduction == "none":
        return out.reshape(-1)                          # (n, l) order matches torch's flattening
    total = jnp.sum(out, dtype=jnp.float32)
    if reduction == "mean":
        return total / jnp.float32(n_valid)
    return total


def _focal_loss_ref(logits, target, gamma=0.0, reduction="mean"):
    """Pure-JAX reference mirroring the torch module."""
    c = logits.shape[1]
    x = logits
    if x.ndim > 2:
        perm = (0,) + tuple(range(2, x.ndim)) + (1,)
        x = jnp.transpose(x, perm).reshape(-1, c)
    else:
        x = x.reshape(-1, c)
    t = target.reshape(-1).astype(jnp.int32)
    logp = jax.nn.log_softmax(x.astype(jnp.float32), axis=-1)
    logpt = jnp.take_along_axis(logp, t[:, None], axis=1)[:, 0]
    pt = jnp.exp(logpt)
    loss = -jnp.power(1.0 - pt, jnp.float32(gamma)) * logpt
    if reduction == "mean":
        return loss.mean()
    if reduction == "sum":
        return loss.sum()
    return loss


if __name__ == "__main__":
    key = jax.random.PRNGKey(0)
    k1, k2, k3, k4 = jax.random.split(key, 4)
    ok = True

    def _check(tag, got, want):
        global ok
        if not jnp.allclose(got, want, rtol=1e-5, atol=1e-5):
            ok = False
            print(f"MISMATCH {tag}: {got} vs {want}")

    # 4-D NCHW case (lane tile divides spatial exactly).
    N, C, H, W = 2, 4, 16, 16
    logits = jax.random.normal(k1, (N, C, H, W), dtype=jnp.float32)
    target = jax.random.randint(k2, (N, H, W), 0, C, dtype=jnp.int32)
    for gamma, reduction in [(0.0, "mean"), (2.0, "mean"), (2.0, "sum"), (1.5, "mean")]:
        got = jax.block_until_ready(focal_loss(logits, target, gamma, reduction))
        _check(f"4D gamma={gamma} red={reduction}", got, _focal_loss_ref(logits, target, gamma, reduction))

    # reduction='none' (per-element loss, torch element order).
    got = jax.block_until_ready(focal_loss(logits, target, 2.0, "none"))
    _check("4D none", got, _focal_loss_ref(logits, target, 2.0, "none"))

    # Ragged spatial extent (L=192, not a multiple of the 128-lane tile) — exercises the tail paths.
    H2, W2 = 16, 12
    logits2 = jax.random.normal(k3, (N, C, H2, W2), dtype=jnp.float32)
    target2 = jax.random.randint(k4, (N, H2, W2), 0, C, dtype=jnp.int32)
    got = jax.block_until_ready(focal_loss(logits2, target2, 2.0, "mean"))
    _check("ragged 4D mean", got, _focal_loss_ref(logits2, target2, 2.0, "mean"))
    got = jax.block_until_ready(focal_loss(logits2, target2, 2.0, "none"))
    _check("ragged 4D none", got, _focal_loss_ref(logits2, target2, 2.0, "none"))

    # 2-D (N, C) case.
    logits3 = jax.random.normal(k1, (64, C), dtype=jnp.float32)
    target3 = jax.random.randint(k2, (64,), 0, C, dtype=jnp.int32)
    got = jax.block_until_ready(focal_loss(logits3, target3, 2.0, "sum"))
    _check("2D", got, _focal_loss_ref(logits3, target3, 2.0, "sum"))

    if ok:
        print("KERNEL_OK")
</pallas_src>

<mosaic_0001>
module attributes {stable_mosaic.version = 11 : i64} {
  func.func @_focal_loss_kernel(%arg0: i32, %arg1: i32, %arg2: memref<1x4x256xf32, #tpu.memory_space<vmem>>, %arg3: memref<1x1x256xi32, #tpu.memory_space<vmem>>, %arg4: memref<1x1x256xf32, #tpu.memory_space<vmem>>) attributes {dimension_semantics = [#tpu.dimension_semantics<parallel>, #tpu.dimension_semantics<arbitrary>], iteration_bounds = array<i64: 2, 1>, scalar_prefetch = 0 : i64, scratch_operands = 0 : i64, tpu.core_type = #tpu.core_type<tc>, window_params = [{transform_indices = @transform_0, window_bounds = array<i64: 1, 4, 256>}, {transform_indices = @transform_1, window_bounds = array<i64: 1, 1, 256>}, {transform_indices = @transform_2, window_bounds = array<i64: 1, 1, 256>}]} {
    %c0_i32 = arith.constant 0 : i32
    %0 = arith.cmpi eq, %arg1, %c0_i32 : i32
    %1 = arith.extui %0 : i1 to i32
    %c0_i32_0 = arith.constant 0 : i32
    %2 = arith.cmpi ne, %1, %c0_i32_0 : i32
    scf.if %2 {
      %cst_17 = arith.constant 0.000000e+00 : f32
      %33 = vector.broadcast %cst_17 : f32 to vector<1x256xf32>
      %c0_18 = arith.constant 0 : index
      %c0_19 = arith.constant 0 : index
      %c0_20 = arith.constant 0 : index
      %34 = vector.load %arg4[%c0_18, %c0_19, %c0_20] : memref<1x1x256xf32, #tpu.memory_space<vmem>>, vector<1x1x256xf32>
      %35 = vector.shape_cast %34 : vector<1x1x256xf32> to vector<1x256xf32>
      %36 = vector.shape_cast %33 : vector<1x256xf32> to vector<1x1x256xf32>
      tpu.vector_store %arg4[%c0_18, %c0_19, %c0_20], %36 {strides = array<i32>} : memref<1x1x256xf32, #tpu.memory_space<vmem>>, vector<1x1x256xf32>,
    } else {
    }
    %c0 = arith.constant 0 : index
    %c0_1 = arith.constant 0 : index
    %c0_2 = arith.constant 0 : index
    %3 = vector.load %arg2[%c0, %c0_1, %c0_2] : memref<1x4x256xf32, #tpu.memory_space<vmem>>, vector<1x4x256xf32>
    %4 = vector.shape_cast %3 : vector<1x4x256xf32> to vector<4x256xf32>
    %c0_3 = arith.constant 0 : index
    %c0_4 = arith.constant 0 : index
    %c0_5 = arith.constant 0 : index
    %5 = vector.load %arg3[%c0_3, %c0_4, %c0_5] : memref<1x1x256xi32, #tpu.memory_space<vmem>>, vector<1x1x256xi32>
    %6 = vector.shape_cast %5 : vector<1x1x256xi32> to vector<1x256xi32>
    %cst = arith.constant dense<0xFF800000> : vector<256xf32>
    %7 = vector.multi_reduction <maximumf>, %4, %cst [0] : vector<4x256xf32> to vector<256xf32>
    %8 = vector.shape_cast %7 : vector<256xf32> to vector<1x256xf32>
    %9 = vector.broadcast %8 : vector<1x256xf32> to vector<4x256xf32>
    %10 = arith.subf %4, %9 : vector<4x256xf32>
    %11 = math.exp %10 : vector<4x256xf32>
    %cst_6 = arith.constant dense<0.000000e+00> : vector<256xf32>
    %12 = vector.multi_reduction <add>, %11, %cst_6 [0] : vector<4x256xf32> to vector<256xf32>
    %13 = vector.shape_cast %12 : vector<256xf32> to vector<1x256xf32>
    %14 = math.log %13 : vector<1x256xf32>
    %15 = tpu.iota {dimensions = array<i32: 0>} : vector<4x256xi32>
    %16 = vector.broadcast %6 : vector<1x256xi32> to vector<4x256xi32>
    %17 = arith.cmpi eq, %15, %16 : vector<4x256xi32>
    %cst_7 = arith.constant 0.000000e+00 : f32
    %18 = vector.broadcast %cst_7 : f32 to vector<4x256xf32>
    %19 = arith.select %17, %10, %18 : vector<4x256xi1>, vector<4x256xf32>
    %cst_8 = arith.constant dense<0.000000e+00> : vector<256xf32>
    %20 = vector.multi_reduction <add>, %19, %cst_8 [0] : vector<4x256xf32> to vector<256xf32>
    %21 = vector.shape_cast %20 : vector<256xf32> to vector<1x256xf32>
    %22 = arith.subf %21, %14 : vector<1x256xf32>
    %cst_9 = arith.constant 1.000000e+00 : f32
    %23 = vector.broadcast %cst_9 : f32 to vector<1x256xf32>
    %cst_10 = arith.constant 0.000000e+00 : f32
    %24 = vector.broadcast %cst_10 : f32 to vector<1x256xf32>
    %25 = arith.subf %24, %23 : vector<1x256xf32>
    %26 = arith.mulf %25, %22 : vector<1x256xf32>
    %c0_11 = arith.constant 0 : index
    %c0_12 = arith.constant 0 : index
    %c0_13 = arith.constant 0 : index
    %27 = vector.load %arg4[%c0_11, %c0_12, %c0_13] : memref<1x1x256xf32, #tpu.memory_space<vmem>>, vector<1x1x256xf32>
    %28 = vector.shape_cast %27 : vector<1x1x256xf32> to vector<1x256xf32>
    %29 = arith.addf %28, %26 : vector<1x256xf32>
    %c0_14 = arith.constant 0 : index
    %c0_15 = arith.constant 0 : index
    %c0_16 = arith.constant 0 : index
    %30 = vector.load %arg4[%c0_14, %c0_15, %c0_16] : memref<1x1x256xf32, #tpu.memory_space<vmem>>, vector<1x1x256xf32>
    %31 = vector.shape_cast %30 : vector<1x1x256xf32> to vector<1x256xf32>
    %32 = vector.shape_cast %29 : vector<1x256xf32> to vector<1x1x256xf32>
    tpu.vector_store %arg4[%c0_14, %c0_15, %c0_16], %32 {strides = array<i32>} : memref<1x1x256xf32, #tpu.memory_space<vmem>>, vector<1x1x256xf32>,
    return
  }
  func.func @transform_0(%arg0: i32, %arg1: i32) -> (i32, i32, i32) {
    %c0_i32 = arith.constant 0 : i32
    %c0_i32_0 = arith.constant 0 : i32
    return %arg0, %c0_i32, %arg1 : i32, i32, i32
  }
  func.func @transform_1(%arg0: i32, %arg1: i32) -> (i32, i32, i32) {
    %c0_i32 = arith.constant 0 : i32
    %c0_i32_0 = arith.constant 0 : i32
    return %arg0, %c0_i32, %arg1 : i32, i32, i32
  }
  func.func @transform_2(%arg0: i32, %arg1: i32) -> (i32, i32, i32) {
    %c0_i32 = arith.constant 0 : i32
    %c0_i32_0 = arith.constant 0 : i32
    %c0_i32_1 = arith.constant 0 : i32
    return %arg0, %c0_i32, %c0_i32_0 : i32, i32, i32
  }
}

</mosaic_0001>

<bundles_post_ra>
// kernel: tpu_custom_call.1
= control target key start
LH: loop header
LB: loop body
LE: loop exit
PB: predicated region body
PF: predicated region fallthrough
CT: control target
= control target key end

     0   :  { %7 = vsyncpa [#allocation3], 0  ;;  %s906_s0 = inlined_call_operand.hbm [shape: f32[2,4,256], index: 0, kind: input, shape index: {}]   ;;  %s907_s1 = inlined_call_operand.hbm [shape: s32[2,1,256], index: 1, kind: input, shape index: {}]   ;;  %s908_s2 = inlined_call_operand.hbm [shape: f32[2,1,256], index: 2, kind: output, shape index: {}]  }
   0x1   :  { %9 = vsyncpa [#allocation3 + $0x1], 0 }
   0x2   :  { %10 = vsyncpa [#allocation6], 0 }
   0x3   :  { %12 = vsyncpa [#allocation6 + $0x1], 0 }
   0x4   :  { %13 = vsyncpa [#allocation4], 0 }
   0x5   :  { %15 = vsyncpa [#allocation4 + $0x1], 0  ;;  %s719_s9 = smov 0   ;;  %s721_s10 = smov 0  }
   0x6   :  { %s723_s11 = smov 0   ;;  %s725_s12 = smov 0  }
   0x7   :  { %s727_s13 = smov 0   ;;  %s729_s14 = smov 0  }
   0x8 LB: > { %s459_s15 = sadd.s32 4294967295, %s697_s14   ;;  %s460_s16 = sadd.s32 4294967294, %s697_s14   ;;  %s697_s14 = sphi %s729_s14, %s21_s14   ;;  %s693_s13 = sphi %s727_s13, %s922_s13   ;;  %s689_s12 = sphi %s725_s12, %s921_s12   ;;  %s685_s11 = sphi %s723_s11, %s920_s11   ;;  %s681_s10 = sphi %s721_s10, %s919_s10   ;;  %s677_s9 = sphi %s719_s9, %s918_s9  }
   0x9   : > { %s33_s17 = sadd.s32 1, %s693_s13  ;;  %s42_s18 = sadd.s32 1, %s685_s11 }
   0xa   : > { %p35_p0 = scmp.ge.s32.totalorder %s33_s17, 2  ;;  %p49_p1 = scmp.ne.s32.totalorder %s685_s11, %s681_s10 }
   0xb   : > { %p50_p2 = scmp.eq.s32.totalorder %s697_s14, 0  ;;  %p55_p3 = scmp.ne.s32.totalorder %s681_s10, %s677_s9 }
   0xc   : > { %s924_s17 = smov (%p35_p0, %s33_s17), 0  ;;  %p56_p5 = scmp.eq.s32.totalorder %s459_s15, 0 }
   0xd   : > { %p760_p4 = por %p50_p2, %p49_p1  ;;  %s37_s20 = ssub.s32 %s693_s13, %s924_s17 }
   0xe   : > { %p107_p6 = scmp.eq.s32.totalorder %s459_s15, 1  ;;  %p40_p7 = scmp.eq.s32.totalorder %s37_s20, 0 }
   0xf   : > { %p766_p8 = por %p56_p5, %p55_p3  ;;  %p113_p10 = scmp.eq.s32.totalorder %s460_s16, 1 }
  0x10   : > { %p770_p9 = por %p107_p6, %p49_p1  ;;  %p498_p13 = scmp.lt.s32.totalorder %s697_s14, 2 }
  0x11   : > { %s775_s23 = scalar_select %p40_p7, %s685_s11, %s42_s18  }
  0x12   : > { %p777_p11 = por %p113_p10, %p55_p3  ;;  %s784_s25 = sand.u32 1, %s685_s11  }
  0x13   : > { %s463_s26 = sshll.u32 %s784_s25, 3  ;;  %s478_s27 = sshll.u32 %s693_s13, 7 }
  0x14   : > { %s145_s30 = scalar_lea.hbm %s906_s0, %s478_s27  ;;  %s137_s3 = scalar_lea.vmem [#allocation2], %s463_s26 }
  0x15   : > { %s147_s4 = sshll.u32 %s137_s3, 4  ;;  %p793_p0 = pnand %p498_p13, %p760_p4  ;;  %s148_s4 = int_to_ptr.vmem [resolvable:$true] %s147_s4 }
  0x16   : > { %p469_p1 = scmp.ge.s32.totalorder %s697_s14, 1  ;;  %p173_p2 = scmp.lt.s32.totalorder %s697_s14, 3 }
  0x17   : > { %s134_s6 = scalar_lea.sflag [#allocation3], %s784_s25  ;;  %p559_p3 = pneg %p793_p0 }
  0x18   : > { %s570_s7 = scalar_lea.vmem %s148_s4, 128  ;;  %s699_s8 = smov [#allocation2]  }
  0x19   : > { %p571_p5 = scmp.ne.s32.totalorder %s148_s4, %s570_s7  ;;  %s575_s15 = sshll.u32 %s699_s8, 4  ;;  %s576_s15 = int_to_ptr.vmem [resolvable:$false] %s575_s15 }
  0x1a   : > { %s577_s16 = scalar_lea.vmem %s576_s15, 256  ;;  %p578_p4 = scmp.lt.s32.totalorder %s148_s4, %s576_s15 }
  0x1b   : > { %p573_p6 = pnand %p571_p5, %p559_p3  ;;  %p579_p10 = scmp.lt.s32.totalorder %s577_s16, %s570_s7 }
  0x1d   : > { %p574_p7 = pneg %p573_p6  ;;  %p580_p13 = por %p579_p10, %p578_p4 }
  0x1f   : > { %p581_p12 = pnand %p580_p13, %p574_p7 }
  0x21   : > { %584 = shalt.err (!%p581_p12)
}
  0x22   : > { %490 = dma.hbm_to_vmem [thread:$0]  (!%p793_p0), %s145_s30, 128, %s148_s4, %s134_s6  }
  0x23   : > { %p811_p5 = pnand %p469_p1, %p173_p2  ;;  %s466_s19 = sshll.u32 %s784_s25, 1 }
  0x24   : > { %s479_s20 = sshll.u32 %s693_s13, 5  ;;  %s158_s29 = scalar_lea.vmem [#allocation5], %s466_s19 }
  0x25   : > { %s166_s28 = scalar_lea.hbm %s907_s1, %s479_s20  ;;  %s168_s3 = sshll.u32 %s158_s29, 4  ;;  %s169_s3 = int_to_ptr.vmem [resolvable:$true] %s168_s3 }
  0x26   : > { %s155_s7 = scalar_lea.sflag [#allocation6], %s784_s25  ;;  %s598_s8 = scalar_lea.vmem %s169_s3, 32 }
  0x27   : > { %p599_p12 = scmp.ne.s32.totalorder %s169_s3, %s598_s8  ;;  %s700_s30 = smov [#allocation5]  }
  0x28   : > { %s603_s4 = sshll.u32 %s700_s30, 4  ;;  %s604_s4 = int_to_ptr.vmem [resolvable:$false] %s603_s4 }
  0x29   : > { %p601_p6 = pnand %p599_p12, %p559_p3  ;;  %s605_s6 = scalar_lea.vmem %s604_s4, 64 }
  0x2a   : > { %p606_p1 = scmp.lt.s32.totalorder %s169_s3, %s604_s4  ;;  %p607_p2 = scmp.lt.s32.totalorder %s605_s6, %s598_s8 }
  0x2b   : > { %p602_p7 = pneg %p601_p6 }
  0x2c   : > { %p608_p4 = por %p607_p2, %p606_p1 }
  0x2e   : > { %p609_p10 = pnand %p608_p4, %p602_p7 }
  0x30   : > { %612 = shalt.err (!%p609_p10)
}
  0x31   : > { %493 = dma.hbm_to_vmem [thread:$0]  (!%p793_p0), %s166_s28, 32, %s169_s3, %s155_s7  }
  0x32   : > { %177 = sbr.rel (%p811_p5) target bundleno = 151 (0x97), region = 28  ;;  %s829_s25 = sand.u32 (!%p811_p5), 1, %s681_s10  }
  0x33   : > { %s470_s15 = sshll.u32 (!%p811_p5), %s829_s25, 3  ;;  %s180_s16 = scalar_lea.sflag (!%p811_p5), [#allocation3], %s829_s25 }
  0x34   : > { %s183_s19 = scalar_lea.vmem (!%p811_p5), [#allocation2], %s470_s15 }
  0x37   : > { %664 = dma.done.wait (%p766_p8), %s180_s16, 128  }
  0x38   : > { %666 = vsyncadd (%p766_p8), %s180_s16, 4294967168  ;;  %s471_s5 = sshll.u32 %s829_s25, 1  ;;  %s189_s18 = scalar_lea.sflag [#allocation6], %s829_s25 }
  0x39   : > { %s839_s20 = scalar_lea.vmem [#allocation5], %s471_s5 }
  0x3a   : > { %668 = dma.done.wait (%p766_p8), %s189_s18, 32  }
  0x3b   : > { %670 = vsyncadd (%p766_p8), %s189_s18, 4294967264  ;;  %v224_v0 = vlaneseq  ;;  %s849_s26 = scalar_lea.vmem [#allocation7], %s471_s5  ;;  %v701_v2 = vmov 0.0   ;;  %vm234_vm1 = vcmask 1043456   ;;  %v229_v3 = vld [vmem:[%s183_s19] sm:$0xff]  ;;  %s480_s21 = sshll.u32 %s689_s12, 5 }
  0x3c   : > { %v232_v4 = vcombine.high %v229_v3, %v229_v3  ;;  %v235_v5 = vsel %vm234_vm1, %v229_v3, -inf  ;;  %v230_v24 = vld [vmem:[%s839_s20] sm:$0x3]  ;;  %v702_v60 = vmov 1966171168   ;;  %s352_s27 = sshll.u32 %s849_s26, 4  ;;  %s350_s3 = scalar_lea.hbm %s908_s2, %s480_s21  ;;  %s353_s27 = int_to_ptr.vmem [resolvable:$true] %s352_s27 }
  0x3d   : > { %vm845_vm0 = vcmp.lt.s32.totalorder %v224_v0, 256  ;;  %v236_v6 = vrot.slane %v235_v5, 4  ;;  %v278_v22 = vshrl.u32 %v224_v0, 7  ;;  %v317_v61 = vunpack.c.l.s4 %v702_v60  ;;  %s338_s7 = scalar_lea.sflag [#allocation4], %s829_s25  ;;  %s613_s8 = scalar_lea.vmem %s353_s27, 32 }
  0x3e   : > { %228 = vst.msk [vmem:[%s849_s26] sm:$0x3] %vm845_vm0, %v701_v2  ;;  %v242_v7 = vsel %vm234_vm1, %v232_v4, -inf  ;;  %p614_p8 = scmp.ne.s32.totalorder %s353_s27, %s613_s8  ;;  %s703_s30 = smov [#allocation7]  }
  0x3f   : > { %v237_v8 = vmax.f32 %v235_v5, %v236_v6  ;;  %v243_v9 = vrot.slane %v242_v7, 4  ;;  %v281_v23 = vsub.s32 0, %v278_v22  ;;  %v285_v25 = vsub.s32 1, %v278_v22  ;;  %s617_s4 = sshll.u32 %s703_s30, 4  ;;  %s618_s4 = int_to_ptr.vmem [resolvable:$false] %s617_s4 }
  0x40   : > { %v318_v5 = vunpack.c.0.s8 %v317_v61  ;;  %p615_p0 = pnand %p614_p8, %p770_p9  ;;  %s619_s12 = scalar_lea.vmem %s618_s4, 64 }
  0x41   : > { %v238_v10 = vrot.slane %v237_v8, 2  ;;  %v244_v11 = vmax.f32 %v242_v7, %v243_v9  ;;  %v282_v26 = vrot.slane %v230_v24, %v281_v23  ;;  %v286_v27 = vrot.slane %v230_v24, %v285_v25  ;;  %p620_p13 = scmp.lt.s32.totalorder %s353_s27, %s618_s4  ;;  %p621_p5 = scmp.lt.s32.totalorder %s619_s12, %s613_s8 }
  0x42   : > { %v321_v9 = vsub.s32 %v318_v5, %v278_v22  ;;  %p616_p3 = pneg %p615_p0 }
  0x43   : > { %v239_v12 = vmax.f32 %v237_v8, %v238_v10  ;;  %v245_v13 = vrot.slane %v244_v11, 2  ;;  %vm287_vm2 = vcmp.eq.s32.totalorder %v278_v22, %v282_v26  ;;  %vm288_vm3 = vcmp.eq.s32.totalorder %v278_v22, %v286_v27  ;;  %p622_p12 = por %p621_p5, %p620_p13 }
  0x45   : > { %v240_v14 = vrot.slane %v239_v12, 1  ;;  %v246_v15 = vmax.f32 %v244_v11, %v245_v13  ;;  %p623_p6 = pnand %p622_p12, %p616_p3 }
  0x47   : > { %v241_v16 = vmax.f32 %v239_v12, %v240_v14  ;;  %v247_v17 = vrot.slane %v246_v15, 1  ;;  %v312_v12 = vld [vmem:[%s849_s26] sm:$0x3] }
  0x49   : > { %v248_v18 = vmax.f32 %v246_v15, %v247_v17 }
  0x4b   : > { %v251_v19 = vcombine.low %v241_v16, %v248_v18 }
  0x4d   : > { %v253_v20 = vsub.f32 %v229_v3, %v251_v19 }
  0x4f   : > { %v254_v21 = vmul.f32 1.442695, %v253_v20  ;;  %v290_v28 = vcombine.high %v253_v20, %v253_v20  ;;  %v292_v30 = vsel %vm287_vm2, %v253_v20, 0.0 }
  0x50   : > { %v294_v36 = vsel %vm234_vm1, %v292_v30, 0.0 }
  0x51   : > { %551 = vpow2.f32 %v254_v21  ;;  %v293_v34 = vsel %vm288_vm3, %v290_v28, 0.0  ;;  %v295_v42 = vrot.slane %v294_v36, 4 }
  0x52   : > { %v301_v39 = vsel %vm234_vm1, %v293_v34, 0.0 }
  0x53   : > { %v302_v45 = vrot.slane %v301_v39, 4  ;;  %v296_v48 = vadd.f32 %v295_v42, %v294_v36 }
  0x55   : > { %v303_v51 = vadd.f32 %v302_v45, %v301_v39  ;;  %v297_v53 = vrot.slane %v296_v48, 2 }
  0x57   : > { %v304_v54 = vrot.slane %v303_v51, 2  ;;  %v298_v55 = vadd.f32 %v297_v53, %v296_v48 }
  0x59   : > { %v305_v56 = vadd.f32 %v304_v54, %v303_v51  ;;  %v299_v57 = vrot.slane %v298_v55, 1 }
  0x5b   : > { %v306_v58 = vrot.slane %v305_v56, 1  ;;  %v300_v59 = vadd.f32 %v299_v57, %v298_v55 }
  0x5d   : > { %v307_v0 = vadd.f32 %v306_v58, %v305_v56 }
  0x5e   : > { %v552_v29 = vpop.eup %551 }
  0x5f   : > { %v257_v31 = vcombine.high %v552_v29, %v552_v29  ;;  %v259_v32 = vsel %vm234_vm1, %v552_v29, 0.0 }
  0x60   : > { %v260_v33 = vrot.slane %v259_v32, 4 }
  0x61   : > { %v266_v35 = vsel %vm234_vm1, %v257_v31, 0.0 }
  0x62   : > { %v261_v37 = vadd.f32 %v260_v33, %v259_v32  ;;  %v267_v38 = vrot.slane %v266_v35, 4 }
  0x64   : > { %v262_v40 = vrot.slane %v261_v37, 2  ;;  %v268_v41 = vadd.f32 %v267_v38, %v266_v35 }
  0x66   : > { %v263_v43 = vadd.f32 %v262_v40, %v261_v37  ;;  %v269_v44 = vrot.slane %v268_v41, 2 }
  0x68   : > { %v264_v46 = vrot.slane %v263_v43, 1  ;;  %v270_v47 = vadd.f32 %v269_v44, %v268_v41 }
  0x6a   : > { %v265_v49 = vadd.f32 %v264_v46, %v263_v43  ;;  %v271_v50 = vrot.slane %v270_v47, 1 }
  0x6c   : > { %v272_v52 = vadd.f32 %v271_v50, %v270_v47  ;;  %553 = vlog2.f32 %v265_v49 }
  0x6e   : > { %555 = vlog2.f32 %v272_v52 }
  0x79   : > { %v554_v62 = vpop.eup %553 }
  0x7a   : > { %v274_v63 = vmul.f32 0.6931472, %v554_v62 }
  0x7b   : > { %v556_v2 = vpop.eup %555 }
  0x7c   : > { %v276_v3 = vmul.f32 0.6931472, %v556_v2  ;;  %v308_v4 = vsub.f32 %v300_v59, %v274_v63 }
  0x7e   : > { %v309_v6 = vsub.f32 %v307_v0, %v276_v3  ;;  %v310_v7 = vmul.f32 -1.0, %v308_v4 }
  0x80   : > { %v311_v8 = vmul.f32 -1.0, %v309_v6 }
  0x82   : > { %v315_v10 = vcombine.low %v310_v7, %v311_v8 }
  0x84   : > { %v322_v11 = vrot.slane %v315_v10, %v321_v9 }
  0x86   : > { %v329_v13 = vrot.slane %v322_v11, %v321_v9 }
  0x88   : > { %v331_v14 = vadd.f32 %v329_v13, %v312_v12 }
  0x8a   : > { %336 = vst.msk [vmem:[%s849_s26] sm:$0x3] %vm845_vm0, %v331_v14 }
  0x8b   : > { %626 = shalt.err (!%p623_p6)
}
  0x8c   : > { %s627_s6 = scalar_lea.hbm %s350_s3, 32  ;;  %s631_s16 = scalar_lea.hbm %s908_s2, 64 }
  0x8d   : > { %p628_p7 = scmp.ne.s32.totalorder %s350_s3, %s627_s6  ;;  %p632_p4 = scmp.lt.s32.totalorder %s350_s3, %s908_s2 }
  0x8e   : > { %p633_p10 = scmp.lt.s32.totalorder %s631_s16, %s627_s6 }
  0x8f   : > { %p629_p1 = pnand %p628_p7, %p770_p9 }
  0x90   : > { %p634_p8 = por %p633_p10, %p632_p4 }
  0x91   : > { %p630_p2 = pneg %p629_p1 }
  0x93   : > { %p635_p0 = pnand %p634_p8, %p630_p2 }
  0x95   : > { %638 = shalt.err (!%p635_p0)
}
  0x96   : > { %485 = dma.vmem_to_hbm [thread:$0]  (%p770_p9), %s353_s27, 32, %s350_s3, %s338_s7  }
  0x97 PF: > { %s364_s18 = sand.u32 1, %s677_s9   ;;  %p917_p3 = scmp.ge.s32.totalorder %s697_s14, 2 }
  0x98   : > { %s365_s20 = scalar_lea.sflag [#allocation4], %s364_s18 }
  0x99   : > { %p495_p13 = pnand %p917_p3, %p777_p11 }
  0x9b   : > { %p496_p5 = pneg %p495_p13 }
  0x9d   : > { %672 = dma.done.wait (%p496_p5), %s365_s20, 32  }
  0x9e   : > { %674 = vsyncadd (%p496_p5), %s365_s20, 4294967264  ;;  %s21_s14 = sadd.s32 1, %s697_s14   ;;  %s918_s9 = smov %s681_s10 }
  0x9f   : > { %p18_p12 = scmp.ge.s32.totalorder %s21_s14, 4   ;;  %s919_s10 = smov %s685_s11 }
  0xa0   : > { %s920_s11 = smov %s775_s23  ;;  %s921_s12 = smov %s693_s13 }
  0xa1   : > { %s922_s13 = smov %s924_s17  ;;  %20 = sbr.rel (!%p18_p12) target bundleno = 8 (0x8), region = 90 }
  0xa6   :  { %370 = vsyncpa [#allocation3], 1 }
  0xa7   :  { %372 = vsyncpa [#allocation3 + $0x1], 1 }
  0xa8   :  { %373 = vsyncpa [#allocation6], 1 }
  0xa9   :  { %375 = vsyncpa [#allocation6 + $0x1], 1 }
  0xaa   :  { %376 = vsyncpa [#allocation4], 1 }
  0xab   :  { %378 = vsyncpa [#allocation4 + $0x1], 1 }

</bundles_post_ra>
